<compile_context>
chip_gen: v5e
topology: v5e:2x2
jax: 0.10.0
libtpu: 0.0.40
codegen_flags: <defaults>
</compile_context>

<pallas_src>
import functools
import math

import jax
import jax.numpy as jnp
from jax.experimental import pallas as pl
from jax.experimental.pallas import tpu as pltpu


_INV_SQRT2 = 1.0 / math.sqrt(2.0)
_TANH_C = math.sqrt(2.0 / math.pi)


def _gelu_exact(x):
    # F.gelu(x, approximate="none") == 0.5 * x * (1 + erf(x / sqrt(2)))
    # TODO(synk): erf lowers to a VPU polynomial; prefer approximate="tanh" (EUP) when accuracy allows.
    return 0.5 * x * (1.0 + jax.lax.erf(x * _INV_SQRT2))


def _gelu_tanh(x):
    # F.gelu(x, approximate="tanh") -- tanh goes to the EUP (its own bundle slot).
    return 0.5 * x * (1.0 + jnp.tanh(_TANH_C * (x + 0.044715 * x * x * x)))


def _gelu_proj_kernel(*refs, approximate, has_bias):
    # refs: x (tm, tk), w (tk, tn), [bias (1, tn) f32], out (tm, tn), acc scratch (tm, tn) f32
    if has_bias:
        x_ref, w_ref, b_ref, o_ref, acc_ref = refs
    else:
        x_ref, w_ref, o_ref, acc_ref = refs
        b_ref = None

    k = pl.program_id(2)

    @pl.when(k == 0)
    def _():
        acc_ref[...] = jnp.zeros_like(acc_ref)

    acc_ref[...] += jnp.dot(
        x_ref[...], w_ref[...], preferred_element_type=jnp.float32
    )

    # Epilogue (bias + GELU + downcast + store) only once per output tile.
    @pl.when(k == pl.num_programs(2) - 1)
    def _():
        y = acc_ref[...]
        if has_bias:
            y = y + b_ref[...]            # bias is pre-cast to f32 in the wrapper
        y = _gelu_tanh(y) if approximate == "tanh" else _gelu_exact(y)
        o_ref[...] = y.astype(o_ref.dtype)


def _round_up(x, m):
    return ((x + m - 1) // m) * m


def _pick_tile(dim, target):
    """If the dim fits in one tile, use the full dim (always a legal block);
    otherwise use `target` (pre-aligned) and pad the array up to a multiple."""
    if dim <= target:
        return dim, dim
    return target, _round_up(dim, target)


def gelu_proj(hidden_states, weight, bias=None, approximate="none",
              *, tm=256, tn=256, tk=512, compute_dtype=None):
    """hidden_states: (..., dim_in); weight: (dim_in, dim_out); bias: (dim_out,) or None.

    tm must be a multiple of 8, tn and tk multiples of 128 (only relevant when the
    corresponding dim exceeds the tile). compute_dtype=jnp.bfloat16 casts x/weight at the
    kernel boundary (mixed-precision linear: bf16 MXU inputs, f32 accumulate) -- roughly
    halves HBM traffic on v5e/v6e/v7x when the kernel is bandwidth-bound.
    """
    assert tm % 8 == 0 and tn % 128 == 0 and tk % 128 == 0

    *lead, dim_in = hidden_states.shape
    dim_out = weight.shape[1]
    M = math.prod(lead) if lead else 1           # static under jit (no jnp.prod on shapes)
    out_dtype = hidden_states.dtype

    x2d = hidden_states.reshape(M, dim_in)
    w = weight
    if compute_dtype is not None:
        x2d = x2d.astype(compute_dtype)
        w = w.astype(compute_dtype)

    tm_eff, Mp = _pick_tile(M, tm)
    tn_eff, Np = _pick_tile(dim_out, tn)
    tk_eff, Kp = _pick_tile(dim_in, tk)

    if Mp != M or Kp != dim_in:
        x2d = jnp.pad(x2d, ((0, Mp - M), (0, Kp - dim_in)))
    if Kp != dim_in or Np != dim_out:
        w = jnp.pad(w, ((0, Kp - dim_in), (0, Np - dim_out)))

    has_bias = bias is not None
    operands = [x2d, w]
    in_specs = [
        pl.BlockSpec((tm_eff, tk_eff), lambda i, j, k: (i, k)),   # x rows / K slab
        pl.BlockSpec((tk_eff, tn_eff), lambda i, j, k: (k, j)),   # weight K x N tile
    ]
    if has_bias:
        b2d = bias.astype(jnp.float32).reshape(1, dim_out)        # pre-cast once, not per step
        if Np != dim_out:
            b2d = jnp.pad(b2d, ((0, 0), (0, Np - dim_out)))
        operands.append(b2d)
        in_specs.append(pl.BlockSpec((1, tn_eff), lambda i, j, k: (0, j)))

    grid = (Mp // tm_eff, Np // tn_eff, Kp // tk_eff)

    kernel = functools.partial(
        _gelu_proj_kernel, approximate=approximate, has_bias=has_bias
    )

    bytes_accessed = (
        x2d.size * x2d.dtype.itemsize
        + w.size * w.dtype.itemsize
        + (b2d.size * 4 if has_bias else 0)
        + Mp * Np * jnp.dtype(out_dtype).itemsize
    )
    cost = pl.CostEstimate(
        flops=2 * M * dim_in * dim_out,
        transcendentals=M * dim_out,
        bytes_accessed=int(bytes_accessed),
    )

    out2d = pl.pallas_call(
        kernel,
        out_shape=jax.ShapeDtypeStruct((Mp, Np), out_dtype),
        grid_spec=pltpu.PrefetchScalarGridSpec(
            num_scalar_prefetch=0,
            grid=grid,
            in_specs=in_specs,
            out_specs=pl.BlockSpec((tm_eff, tn_eff), lambda i, j, k: (i, j)),
            scratch_shapes=[pltpu.VMEM((tm_eff, tn_eff), jnp.float32)],
        ),
        compiler_params=pltpu.CompilerParams(
            # M / N parallel (megacore sharding on v7x), K is the reduction -> arbitrary.
            dimension_semantics=("parallel", "parallel", "arbitrary"),
        ),
        cost_estimate=cost,
    )(*operands)

    out2d = out2d[:M, :dim_out]
    return out2d.reshape(*lead, dim_out)


class GELUPallas:
    """Mirror of the PyTorch GELU module (Linear + GELU), parameters built in-script."""

    def __init__(self, dim_in, dim_out, approximate="none", bias=True, key=None,
                 compute_dtype=None):
        if key is None:
            key = jax.random.PRNGKey(0)
        kw, kb = jax.random.split(key)
        bound = 1.0 / math.sqrt(dim_in)
        # Stored as (dim_in, dim_out) so the kernel does x @ W directly.
        self.weight = jax.random.uniform(
            kw, (dim_in, dim_out), minval=-bound, maxval=bound, dtype=jnp.float32
        )
        self.bias = (
            jax.random.uniform(kb, (dim_out,), minval=-bound, maxval=bound, dtype=jnp.float32)
            if bias else None
        )
        self.approximate = approximate
        self.compute_dtype = compute_dtype

    def __call__(self, hidden_states):
        return gelu_proj(hidden_states, self.weight, self.bias, self.approximate,
                         compute_dtype=self.compute_dtype)


if __name__ == "__main__":
    key = jax.random.PRNGKey(0)
    kx, kp, kx2, kp2 = jax.random.split(key, 4)

    # Small shapes consistent with the module: (batch, seq, dim_in) -> (batch, seq, dim_out)
    batch, seq, dim_in, dim_out = 2, 8, 32, 64
    x = jax.random.normal(kx, (batch, seq, dim_in), dtype=jnp.float32)

    # Exact ("none") GELU
    mod = GELUPallas(dim_in, dim_out, approximate="none", bias=True, key=kp)
    out = jax.block_until_ready(mod(x))
    ref = jax.nn.gelu(x.reshape(-1, dim_in) @ mod.weight + mod.bias,
                      approximate=False).reshape(batch, seq, dim_out)
    assert out.shape == (batch, seq, dim_out)
    assert jnp.allclose(out, ref, atol=1e-5, rtol=1e-5), "mismatch (exact gelu)"

    # Tanh-approximate GELU
    mod_t = GELUPallas(dim_in, dim_out, approximate="tanh", bias=True, key=kp)
    out_t = jax.block_until_ready(mod_t(x))
    ref_t = jax.nn.gelu(x.reshape(-1, dim_in) @ mod_t.weight + mod_t.bias,
                        approximate=True).reshape(batch, seq, dim_out)
    assert jnp.allclose(out_t, ref_t, atol=1e-5, rtol=1e-5), "mismatch (tanh gelu)"

    # Larger, non-aligned shapes: exercises M/N/K tiling, padding, and the no-bias path.
    b2, s2, din2, dout2 = 2, 150, 600, 300
    x2 = jax.random.normal(kx2, (b2, s2, din2), dtype=jnp.float32)
    mod2 = GELUPallas(din2, dout2, approximate="tanh", bias=False, key=kp2)
    out2 = jax.block_until_ready(mod2(x2))
    ref2 = jax.nn.gelu(x2.reshape(-1, din2) @ mod2.weight,
                       approximate=True).reshape(b2, s2, dout2)
    assert out2.shape == (b2, s2, dout2)
    assert jnp.allclose(out2, ref2, atol=1e-2, rtol=1e-2), "mismatch (tiled/padded path)"

    print("KERNEL_OK")
</pallas_src>

<mosaic_0001>
module attributes {stable_mosaic.version = 11 : i64} {
  func.func @_gelu_proj_kernel(%arg0: i32, %arg1: i32, %arg2: i32, %arg3: memref<16x32xf32, #tpu.memory_space<vmem>>, %arg4: memref<32x64xf32, #tpu.memory_space<vmem>>, %arg5: memref<1x64xf32, #tpu.memory_space<vmem>>, %arg6: memref<16x64xf32, #tpu.memory_space<vmem>>, %arg7: memref<16x64xf32, #tpu.memory_space<vmem>>) attributes {dimension_semantics = [#tpu.dimension_semantics<parallel>, #tpu.dimension_semantics<parallel>, #tpu.dimension_semantics<arbitrary>], iteration_bounds = array<i64: 1, 1, 1>, scalar_prefetch = 0 : i64, scratch_operands = 1 : i64, tpu.core_type = #tpu.core_type<tc>, window_params = [{transform_indices = @transform_0, window_bounds = array<i64: 16, 32>}, {transform_indices = @transform_1, window_bounds = array<i64: 32, 64>}, {transform_indices = @transform_2, window_bounds = array<i64: 1, 64>}, {transform_indices = @transform_3, window_bounds = array<i64: 16, 64>}]} {
    %c0_i32 = arith.constant 0 : i32
    %0 = arith.cmpi eq, %arg2, %c0_i32 : i32
    %1 = arith.extui %0 : i1 to i32
    %c0_i32_0 = arith.constant 0 : i32
    %2 = arith.cmpi ne, %1, %c0_i32_0 : i32
    scf.if %2 {
      %cst_10 = arith.constant 0.000000e+00 : f32
      %12 = vector.broadcast %cst_10 : f32 to vector<16x64xf32>
      %c0_11 = arith.constant 0 : index
      %c0_12 = arith.constant 0 : index
      %13 = vector.load %arg7[%c0_11, %c0_12] : memref<16x64xf32, #tpu.memory_space<vmem>>, vector<16x64xf32>
      tpu.vector_store %arg7[%c0_11, %c0_12], %12 {strides = array<i32>} : memref<16x64xf32, #tpu.memory_space<vmem>>, vector<16x64xf32>,
    } else {
    }
    %c0 = arith.constant 0 : index
    %c0_1 = arith.constant 0 : index
    %3 = vector.load %arg7[%c0, %c0_1] : memref<16x64xf32, #tpu.memory_space<vmem>>, vector<16x64xf32>
    %c0_2 = arith.constant 0 : index
    %c0_3 = arith.constant 0 : index
    %4 = vector.load %arg3[%c0_2, %c0_3] : memref<16x32xf32, #tpu.memory_space<vmem>>, vector<16x32xf32>
    %c0_4 = arith.constant 0 : index
    %c0_5 = arith.constant 0 : index
    %5 = vector.load %arg4[%c0_4, %c0_5] : memref<32x64xf32, #tpu.memory_space<vmem>>, vector<32x64xf32>
    %cst = arith.constant dense<0.000000e+00> : vector<16x64xf32>
    %6 = tpu.matmul %4, %5, %cst {dimension_numbers = #tpu.dot_dimension_numbers<[1], [0], [0], [1], [0, 0, 1, 1], [], []>} : vector<16x32xf32>, vector<32x64xf32>, vector<16x64xf32> -> vector<16x64xf32>
    %7 = arith.addf %3, %6 : vector<16x64xf32>
    %c0_6 = arith.constant 0 : index
    %c0_7 = arith.constant 0 : index
    %8 = vector.load %arg7[%c0_6, %c0_7] : memref<16x64xf32, #tpu.memory_space<vmem>>, vector<16x64xf32>
    tpu.vector_store %arg7[%c0_6, %c0_7], %7 {strides = array<i32>} : memref<16x64xf32, #tpu.memory_space<vmem>>, vector<16x64xf32>,
    %c0_i32_8 = arith.constant 0 : i32
    %9 = arith.cmpi eq, %arg2, %c0_i32_8 : i32
    %10 = arith.extui %9 : i1 to i32
    %c0_i32_9 = arith.constant 0 : i32
    %11 = arith.cmpi ne, %10, %c0_i32_9 : i32
    scf.if %11 {
      %c0_10 = arith.constant 0 : index
      %c0_11 = arith.constant 0 : index
      %12 = vector.load %arg7[%c0_10, %c0_11] : memref<16x64xf32, #tpu.memory_space<vmem>>, vector<16x64xf32>
      %c0_12 = arith.constant 0 : index
      %c0_13 = arith.constant 0 : index
      %13 = vector.load %arg5[%c0_12, %c0_13] : memref<1x64xf32, #tpu.memory_space<vmem>>, vector<1x64xf32>
      %14 = vector.broadcast %13 : vector<1x64xf32> to vector<16x64xf32>
      %15 = arith.addf %12, %14 : vector<16x64xf32>
      %cst_14 = arith.constant 5.000000e-01 : f32
      %16 = vector.broadcast %cst_14 : f32 to vector<16x64xf32>
      %17 = arith.mulf %16, %15 : vector<16x64xf32>
      %cst_15 = arith.constant 0.707106769 : f32
      %18 = vector.broadcast %cst_15 : f32 to vector<16x64xf32>
      %19 = arith.mulf %15, %18 : vector<16x64xf32>
      %20 = math.erf %19 : vector<16x64xf32>
      %cst_16 = arith.constant 1.000000e+00 : f32
      %21 = vector.broadcast %cst_16 : f32 to vector<16x64xf32>
      %22 = arith.addf %21, %20 : vector<16x64xf32>
      %23 = arith.mulf %17, %22 : vector<16x64xf32>
      %c0_17 = arith.constant 0 : index
      %c0_18 = arith.constant 0 : index
      %24 = vector.load %arg6[%c0_17, %c0_18] : memref<16x64xf32, #tpu.memory_space<vmem>>, vector<16x64xf32>
      tpu.vector_store %arg6[%c0_17, %c0_18], %23 {strides = array<i32>} : memref<16x64xf32, #tpu.memory_space<vmem>>, vector<16x64xf32>,
    } else {
    }
    return
  }
  func.func @transform_0(%arg0: i32, %arg1: i32, %arg2: i32) -> (i32, i32) {
    %c0_i32 = arith.constant 0 : i32
    return %arg0, %arg2 : i32, i32
  }
  func.func @transform_1(%arg0: i32, %arg1: i32, %arg2: i32) -> (i32, i32) {
    %c0_i32 = arith.constant 0 : i32
    return %arg2, %arg1 : i32, i32
  }
  func.func @transform_2(%arg0: i32, %arg1: i32, %arg2: i32) -> (i32, i32) {
    %c0_i32 = arith.constant 0 : i32
    %c0_i32_0 = arith.constant 0 : i32
    return %c0_i32, %arg1 : i32, i32
  }
  func.func @transform_3(%arg0: i32, %arg1: i32, %arg2: i32) -> (i32, i32) {
    %c0_i32 = arith.constant 0 : i32
    return %arg0, %arg1 : i32, i32
  }
}

</mosaic_0001>

<bundles_post_ra>
// kernel: tpu_custom_call.1
= control target key start
LH: loop header
LB: loop body
LE: loop exit
PB: predicated region body
PF: predicated region fallthrough
CT: control target
= control target key end

     0   :  { %8 = vsyncpa [#allocation4], 0  ;;  %s386_s0 = inlined_call_operand.hbm [shape: f32[16,32], index: 0, kind: input, shape index: {}]   ;;  %s387_s1 = inlined_call_operand.hbm [shape: f32[32,64], index: 1, kind: input, shape index: {}]   ;;  %s388_s2 = inlined_call_operand.vmem [shape: f32[1,64], index: 2, kind: input, shape index: {}]   ;;  %s389_s3 = inlined_call_operand.hbm [shape: f32[16,64], index: 3, kind: output, shape index: {}]  }
   0x1   :  { %9 = vsyncpa [#allocation7], 0 }
   0x2   :  { %10 = vsyncpa [#allocation5], 0  ;;  %s15_s14 = sshll.u32 %s386_s0, 4  ;;  %s315_s15 = smov [#allocation3]   ;;  %s16_s14 = int_to_ptr.hbm [resolvable:$true] %s15_s14 }
   0x3   :  { %s17_s16 = sshll.u32 %s315_s15, 4  ;;  %s28_s19 = sshll.u32 %s387_s1, 4  ;;  %s18_s16 = int_to_ptr.vmem [resolvable:$true] %s17_s16  ;;  %s29_s19 = int_to_ptr.hbm [resolvable:$true] %s28_s19 }
   0x4   :  { %s316_s20 = smov 128   ;;  %s317_s21 = smov 8  }
   0x5   :  { %23 = dma.hbm_to_vmem [thread:$0]  %s16_s14, 256, %s18_s16, [#allocation4], %s316_s20, %s316_s20, %s317_s21  }
   0x6   :  { %s318_s22 = smov [#allocation6]  }
   0x7   :  { %s30_s23 = sshll.u32 %s318_s22, 4  ;;  %s31_s23 = int_to_ptr.vmem [resolvable:$true] %s30_s23 }
   0x8   :  { %36 = dma.hbm_to_vmem [thread:$0]  %s29_s19, 512, %s31_s23, [#allocation7], %s316_s20, %s316_s20, %s317_s21  }
   0x9   :  { %309 = dma.done.wait [#allocation4], 256  }
   0xa   :  { %310 = vsyncadd [#allocation4], 4294967040 }
   0xb   :  { %311 = dma.done.wait [#allocation7], 512  }
   0xc   :  { %312 = vsyncadd [#allocation7], 4294966784  ;;  %vm51_vm0 = vcmask 523264   ;;  %v319_v0 = vmov 0.0   ;;  %v61_v1 = vld [vmem:[#allocation6 + $0x18] sm:$0xff]  ;;  %v60_v2 = vld [vmem:[#allocation6 + $0x10] sm:$0xff] }
   0xd   :  { %52 = vst.msk [vmem:[#allocation2] sm:$0xff] %vm51_vm0, %v319_v0  ;;  %81 = vmatpush.msra.mxu0 %v61_v1  ;;  %222 = vmatpush.msra.mxu1 %v61_v1  ;;  %v59_v3 = vld [vmem:[#allocation6 + $0x8] sm:$0xff]  ;;  %v58_v4 = vld [vmem:[#allocation6] sm:$0xff]  ;;  %v56_v5 = vld [vmem:[#allocation3] sm:$0xff]  ;;  %vm62_vm1 = vcmask 261120   ;;  %s204_s27 = sshll.u32 %s389_s3, 4  ;;  %s205_s27 = int_to_ptr.hbm [resolvable:$true] %s204_s27 }
   0xe   :  { %53 = vst.msk [vmem:[#allocation2 + $0x8] sm:$0xff] %vm51_vm0, %v319_v0  ;;  %v57_v6 = vld [vmem:[#allocation3 + $0x8] sm:$0xff]  ;;  %v232_v13 = vld [vmem:[%s388_s2] ss:$0 sm:$0xff]  ;;  %s320_s2 = smov [#allocation8]  }
   0xf   :  { %82 = vmatpush.msra.mxu0 %v60_v2  ;;  %223 = vmatpush.msra.mxu1 %v60_v2  ;;  %s202_s24 = sshll.u32 %s320_s2, 4  ;;  %s203_s24 = int_to_ptr.vmem [resolvable:$true] %s202_s24 }
  0x11   :  { %83 = vmatpush.msra.mxu0 %v59_v3  ;;  %224 = vmatpush.msra.mxu1 %v59_v3 }
  0x13   :  { %84 = vmatpush.msra.mxu0 %v58_v4  ;;  %225 = vmatpush.msra.mxu1 %v58_v4 }
  0x14   :  { %218 = vmatmul.msk.f32.vlgmr.msra.gmra.mxu0 %vm62_vm1, %v56_v5  ;;  %219 = vmatmul.msk.f32.vlgmr.msra.gmra.mxu1 %vm62_vm1, %v57_v6  ;;  %v54_v7 = vld [vmem:[#allocation2] sm:$0xff] }
  0x15   :  { %v55_v8 = vld [vmem:[#allocation2 + $0x8] sm:$0xff] }
  0x91   :  { %v86_v9 = vpop.f32.mrf.mxu0  ;;  %v89_v10 = vpop.f32.mrf.mxu1 }
  0x92   :  { %v92_v11 = vadd.f32 %v86_v9, %v54_v7  ;;  %v93_v12 = vadd.f32 %v89_v10, %v55_v8 }
  0x94   :  { %95 = vst.msk [vmem:[#allocation2] sm:$0xff] %vm51_vm0, %v92_v11 }
  0x95   :  { %96 = vst.msk [vmem:[#allocation2 + $0x8] sm:$0xff] %vm51_vm0, %v93_v12 }
  0x9b   :  { %v100_v14 = vld [vmem:[#allocation2] sm:$0xff] }
  0x9c   :  { %v101_v15 = vld [vmem:[#allocation2 + $0x8] sm:$0xff]  ;;  %v360_v16 = vadd.f32 %v232_v13, %v100_v14 }
  0x9d   :  { %v362_v17 = vadd.f32 %v232_v13, %v101_v15 }
  0x9e   :  { %v365_v18 = vmul.f32 0.70710677, %v360_v16 }
  0x9f   :  { %v368_v19 = vmul.f32 0.70710677, %v362_v17 }
  0xa0   :  { %v112_v20 = vmul.f32 %v365_v18, %v365_v18 }
  0xa1   :  { %v152_v21 = vmul.f32 %v368_v19, %v368_v19 }
  0xa2   :  { %v113_v22 = vmin.f32 %v112_v20, 16.0 }
  0xa3   :  { %v153_v23 = vmin.f32 %v152_v21, 16.0 }
  0xa4   :  { %v114_v24 = vmul.f32 2.1237322e-06, %v113_v22  ;;  %v125_v25 = vmul.f32 3.8918573e-05, %v113_v22 }
  0xa5   :  { %v154_v26 = vmul.f32 2.1237322e-06, %v153_v23  ;;  %v165_v27 = vmul.f32 3.8918573e-05, %v153_v23 }
  0xa6   :  { %v115_v28 = vadd.f32 0.00028619796, %v114_v24  ;;  %v126_v29 = vadd.f32 0.001143296, %v125_v25 }
  0xa7   :  { %v155_v30 = vadd.f32 0.00028619796, %v154_v26  ;;  %v166_v31 = vadd.f32 0.001143296, %v165_v27 }
  0xa8   :  { %v116_v32 = vmul.f32 %v115_v28, %v113_v22  ;;  %v127_v33 = vmul.f32 %v126_v29, %v113_v22 }
  0xa9   :  { %v156_v34 = vmul.f32 %v155_v30, %v153_v23  ;;  %v167_v35 = vmul.f32 %v166_v31, %v153_v23  ;;  %v108_v30 = vmul.f32 0.5, %v360_v16 }
  0xaa   :  { %v117_v36 = vadd.f32 0.0036580483, %v116_v32  ;;  %v128_v37 = vadd.f32 0.014752088, %v127_v33 }
  0xab   :  { %v168_v38 = vadd.f32 0.014752088, %v167_v35  ;;  %v157_v40 = vadd.f32 0.0036580483, %v156_v34 }
  0xac   :  { %v129_v39 = vmul.f32 %v128_v37, %v113_v22  ;;  %v118_v42 = vmul.f32 %v117_v36, %v113_v22 }
  0xad   :  { %v169_v41 = vmul.f32 %v168_v38, %v153_v23  ;;  %v158_v46 = vmul.f32 %v157_v40, %v153_v23 }
  0xae   :  { %v130_v43 = vadd.f32 0.112945676, %v129_v39  ;;  %v119_v48 = vadd.f32 0.05243302, %v118_v42 }
  0xaf   :  { %v170_v44 = vadd.f32 0.112945676, %v169_v41  ;;  %v159_v52 = vadd.f32 0.05243302, %v158_v46 }
  0xb0   :  { %v131_v45 = vmul.f32 %v130_v43, %v113_v22  ;;  %v120_v54 = vmul.f32 %v119_v48, %v113_v22 }
  0xb1   :  { %v171_v47 = vmul.f32 %v170_v44, %v153_v23  ;;  %v160_v57 = vmul.f32 %v159_v52, %v153_v23 }
  0xb2   :  { %v132_v49 = vadd.f32 0.4994258, %v131_v45  ;;  %v121_v58 = vadd.f32 0.18741608, %v120_v54 }
  0xb3   :  { %v172_v50 = vadd.f32 0.4994258, %v171_v47  ;;  %v161_v59 = vadd.f32 0.18741608, %v160_v57 }
  0xb4   :  { %v133_v51 = vmul.f32 %v132_v49, %v113_v22  ;;  %v122_v61 = vmul.f32 %v121_v58, %v113_v22 }
  0xb5   :  { %v173_v53 = vmul.f32 %v172_v50, %v153_v23  ;;  %v162_v0 = vmul.f32 %v161_v59, %v153_v23 }
  0xb6   :  { %v134_v55 = vadd.f32 1.0, %v133_v51  ;;  %v123_v3 = vadd.f32 1.1283791, %v122_v61 }
  0xb7   :  { %v174_v56 = vadd.f32 1.0, %v173_v53  ;;  %v163_v9 = vadd.f32 1.1283791, %v162_v0 }
  0xb8   :  { %233 = vrcp.f32 %v134_v55  ;;  %v146_v4 = vand.u32 2147483648, %v134_v55  ;;  %v144_v7 = vand.u32 2147483647, %v134_v55  ;;  %vm140_vm4 = vweird.f32 %v134_v55 }
  0xb9   :  { %235 = vrcp.f32 %v174_v56  ;;  %v186_v8 = vand.u32 2147483648, %v174_v56  ;;  %v184_v11 = vand.u32 2147483647, %v174_v56  ;;  %vm180_vm6 = vweird.f32 %v174_v56 }
  0xba   :  { %v147_v13 = vor.u32 1.1754944e-38, %v146_v4  ;;  %v124_v15 = vmul.f32 %v123_v3, %v365_v18  ;;  %vm145_vm7 = vcmp.eq.f32.partialorder %v144_v7, 8.507059e+37  ;;  %v164_v23 = vmul.f32 %v163_v9, %v368_v19 }
  0xbb   :  { %v187_v21 = vor.u32 1.1754944e-38, %v186_v8  ;;  %vm185_vm9 = vcmp.eq.f32.partialorder %v184_v11, 8.507059e+37  ;;  %v109_v18 = vmul.f32 0.5, %v362_v17 }
  0xbe   :  { %v234_v60 = vpop.eup %233 }
  0xbf   :  { %v236_v62 = vpop.eup %235  ;;  %v136_v63 = vmul.f32 %v234_v60, %v134_v55  ;;  %vm141_vm2 = vweird.f32 %v234_v60 }
  0xc0   :  { %v176_v1 = vmul.f32 %v236_v62, %v174_v56  ;;  %vm181_vm3 = vweird.f32 %v236_v62  ;;  %vm142_vm5 = vmor %vm140_vm4, %vm141_vm2 }
  0xc1   :  { %v137_v2 = vsub.f32 1.0, %v136_v63  ;;  %vm182_vm8 = vmor %vm180_vm6, %vm181_vm3 }
  0xc2   :  { %v177_v5 = vsub.f32 1.0, %v176_v1 }
  0xc3   :  { %v138_v6 = vmul.f32 %v234_v60, %v137_v2 }
  0xc4   :  { %v178_v10 = vmul.f32 %v236_v62, %v177_v5 }
  0xc5   :  { %v139_v12 = vadd.f32 %v234_v60, %v138_v6 }
  0xc6   :  { %v179_v14 = vadd.f32 %v236_v62, %v178_v10 }
  0xc7   :  { %v143_v20 = vsel %vm142_vm5, %v234_v60, %v139_v12 }
  0xc8   :  { %v148_v22 = vsel %vm145_vm7, %v147_v13, %v143_v20  ;;  %v183_v24 = vsel %vm182_vm8, %v236_v62, %v179_v14 }
  0xc9   :  { %v149_v25 = vmul.f32 %v148_v22, %v124_v15  ;;  %v188_v26 = vsel %vm185_vm9, %v187_v21, %v183_v24 }
  0xca   :  { %v189_v27 = vmul.f32 %v188_v26, %v164_v23 }
  0xcb   :  { %v220_v28 = vclamps-f32 %v149_v25, 1.0 }
  0xcc   :  { %v221_v29 = vclamps-f32 %v189_v27, 1.0 }
  0xcd   :  { %v192_v31 = vadd.f32 1.0, %v220_v28 }
  0xce   :  { %v193_v32 = vadd.f32 1.0, %v221_v29 }
  0xcf   :  { %v194_v19 = vmul.f32 %v192_v31, %v108_v30 }
  0xd0   :  { %v195_v33 = vmul.f32 %v193_v32, %v109_v18 }
  0xd1   :  { %196 = vst.msk [vmem:[#allocation8] sm:$0xff] %vm51_vm0, %v194_v19 }
  0xd2   :  { %197 = vst.msk [vmem:[#allocation8 + $0x8] sm:$0xff] %vm51_vm0, %v195_v33 }
  0xd3   :  { %210 = dma.vmem_to_hbm [thread:$0]  %s203_s24, 256, %s205_s27, [#allocation5], %s316_s20, %s316_s20, %s317_s21  }
  0xd4   :  { %313 = dma.done.wait [#allocation5], 256  }
  0xd5   :  { %314 = vsyncadd [#allocation5], 4294967040 }
  0xd6   :  { %215 = vsyncpa [#allocation4], 1 }
  0xd7   :  { %216 = vsyncpa [#allocation7], 1 }
  0xd8   :  { %217 = vsyncpa [#allocation5], 1 }

</bundles_post_ra>
